<compile_context>
chip_gen: v7x
topology: tpu7x:2x2x1
jax: 0.10.0
libtpu: 0.0.40
codegen_flags: <defaults>
</compile_context>

<pallas_src>
import jax
import jax.numpy as jnp
from jax.experimental import pallas as pl
from jax.experimental.pallas import tpu as pltpu

HIDDEN = 256
LN_EPS = 1e-5


def _round_up(n, m):
    return ((n + m - 1) // m) * m


# ----------------------------------------------------------------------------
# Kernel
# ----------------------------------------------------------------------------
def _ddpg_actor_kernel(
    x_ref,
    w1_ref, b1_ref, g1_ref, be1_ref,
    w2_ref, b2_ref, g2_ref, be2_ref,
    w3_ref, b3_ref, g3_ref, be3_ref,
    w4_ref, b4_ref,
    ah_ref,
    out_ref,
):
    def lin_ln_relu(h, w_ref, b_ref, g_ref, be_ref):
        # Linear: bf16 MXU inputs, f32 accumulate.
        y = jnp.dot(h, w_ref[...], preferred_element_type=jnp.float32) + b_ref[...]
        # LayerNorm over last axis — two-pass (mean, centered variance) in f32.
        mu = jnp.mean(y, axis=-1, keepdims=True)
        yc = y - mu
        var = jnp.mean(yc * yc, axis=-1, keepdims=True)
        yn = yc * jax.lax.rsqrt(var + LN_EPS)
        # Affine + ReLU in the dtype of the LN parameters (bf16 on v6e/v7x,
        # f32 on v5e); result is fed to the next MXU dot as bf16.
        gv = g_ref[...]
        yn = yn.astype(gv.dtype) * gv + be_ref[...]
        return jnp.maximum(yn, 0).astype(jnp.bfloat16)

    h = x_ref[...]                       # already bf16 (cast in wrapper)
    h = lin_ln_relu(h, w1_ref, b1_ref, g1_ref, be1_ref)
    h = lin_ln_relu(h, w2_ref, b2_ref, g2_ref, be2_ref)
    h = lin_ln_relu(h, w3_ref, b3_ref, g3_ref, be3_ref)
    y = jnp.dot(h, w4_ref[...], preferred_element_type=jnp.float32) + b4_ref[...]
    out_ref[...] = jnp.tanh(y) * ah_ref[...]


# ----------------------------------------------------------------------------
# Parameter preparation (one-time; hoisted out of the per-call path)
# ----------------------------------------------------------------------------
def _default_epilogue_dtype():
    """bf16 LN/ReLU epilogue on v6e/v7x; f32 on v5e and older (no bf16 VPU)."""
    try:
        kind = jax.devices()[0].device_kind.lower()
    except Exception:
        return jnp.float32
    if any(g in kind for g in ("v2", "v3", "v4", "v5")):
        return jnp.float32
    return jnp.bfloat16


def _num_tensorcores_per_chip():
    """2 TCs per chip on v4 / v7x (megacore); otherwise 1."""
    try:
        kind = jax.devices()[0].device_kind.lower()
    except Exception:
        return 1
    return 2 if ("v4" in kind or "v7" in kind) else 1


def prepare_params(params, action_space_high, *, epilogue_dtype=None):
    """Pad / cast parameters once so the per-call path only touches x."""
    if epilogue_dtype is None:
        epilogue_dtype = _default_epilogue_dtype()
    bf16, f32, ep = jnp.bfloat16, jnp.float32, epilogue_dtype

    in_size = params["w1"].shape[0]
    out_size = params["w4"].shape[1]
    Np = _round_up(max(out_size, 1), 128)   # lane-dense output width

    w4 = jnp.zeros((HIDDEN, Np), bf16).at[:, :out_size].set(params["w4"].astype(bf16))
    b4 = jnp.zeros((1, Np), f32).at[:, :out_size].set(params["b4"].astype(f32))
    ah = jnp.zeros((1, Np), f32).at[:, :out_size].set(
        jnp.asarray(action_space_high, f32).reshape(1, out_size))

    args = (
        params["w1"].astype(bf16), params["b1"].astype(f32),
        params["g1"].astype(ep), params["be1"].astype(ep),
        params["w2"].astype(bf16), params["b2"].astype(f32),
        params["g2"].astype(ep), params["be2"].astype(ep),
        params["w3"].astype(bf16), params["b3"].astype(f32),
        params["g3"].astype(ep), params["be3"].astype(ep),
        w4, b4, ah,
    )
    return {"args": args, "in_size": in_size, "out_size": out_size, "Np": Np}


# ----------------------------------------------------------------------------
# Forward wrapper
# ----------------------------------------------------------------------------
def _tile_batch(B, block_b, num_cores):
    Bp_min = _round_up(max(B, 1), 16)                 # bf16 sublane packing
    Bm = min(_round_up(block_b, 16), Bp_min)
    if num_cores >= 2 and Bp_min > 16:
        # Make sure the "parallel" grid axis has >= num_cores steps so both
        # TensorCores get work on v4 / v7x.
        per_core = _round_up(pl.cdiv(Bp_min, num_cores), 16)
        Bm = min(Bm, per_core)
    Bm = max(Bm, 16)
    Bp = _round_up(max(B, 1), Bm)
    return Bm, Bp


def ddpg_actor_forward(x, prepared, *, block_b=1024):
    """x: (B, input_size) float32.  prepared: output of prepare_params()."""
    B, in_size = x.shape
    assert in_size == prepared["in_size"]
    out_size, Np = prepared["out_size"], prepared["Np"]
    param_args = prepared["args"]

    num_cores = _num_tensorcores_per_chip()
    Bm, Bp = _tile_batch(B, block_b, num_cores)
    nb = Bp // Bm

    # x: batch-padded only (no feature padding), streamed as bf16.
    x_bf = x.astype(jnp.bfloat16)
    if Bp != B:
        xp = jnp.zeros((Bp, in_size), jnp.bfloat16).at[:B, :].set(x_bf)
    else:
        xp = x_bf

    args = (xp,) + param_args

    def resident(a):
        # Same block every grid step -> fetched once, stays VMEM-resident.
        return pl.BlockSpec(a.shape, lambda i: (0, 0))

    in_specs = [pl.BlockSpec((Bm, in_size), lambda i: (i, 0))] + \
               [resident(a) for a in param_args]
    out_spec = pl.BlockSpec((Bm, Np), lambda i: (i, 0))

    # VMEM budget (covers v5e's 16 MiB default scoped limit).
    param_bytes = sum(int(a.size) * a.dtype.itemsize for a in param_args)
    io_bytes = 2 * (Bm * in_size * 2 + Bm * Np * 4)          # double-buffered x/out
    scratch_bytes = 8 * Bm * HIDDEN * 4                       # generous f32 temps
    vmem_limit = int(min(max(2 * (param_bytes + io_bytes + scratch_bytes),
                             32 << 20), 48 << 20))

    flops = 2 * Bp * (in_size * HIDDEN + 2 * HIDDEN * HIDDEN + HIDDEN * Np) \
        + 10 * Bp * HIDDEN
    transcendentals = Bp * (3 + Np)                           # rsqrt x3 + tanh
    bytes_accessed = int(xp.nbytes) + param_bytes + Bp * Np * 4

    out_padded = pl.pallas_call(
        _ddpg_actor_kernel,
        out_shape=jax.ShapeDtypeStruct((Bp, Np), jnp.float32),
        grid=(nb,),
        in_specs=in_specs,
        out_specs=out_spec,
        compiler_params=pltpu.CompilerParams(
            dimension_semantics=("parallel",),
            vmem_limit_bytes=vmem_limit),
        cost_estimate=pl.CostEstimate(
            flops=flops,
            transcendentals=transcendentals,
            bytes_accessed=bytes_accessed),
    )(*args)

    return out_padded[:B, :out_size]


# ----------------------------------------------------------------------------
# Init + pure-JAX reference
# ----------------------------------------------------------------------------
def init_params(key, input_size, output_size):
    """Deterministic init mimicking the PyTorch module's shapes/init ranges.

    Weights are stored transposed vs. PyTorch: (in, out), so layers are h @ W + b.
    """
    ks = jax.random.split(key, 8)

    def linear(kw, kb, fan_in, fan_out, w_scale=None):
        bound = 1.0 / jnp.sqrt(fan_in)
        w_bound = bound if w_scale is None else w_scale
        w = jax.random.uniform(kw, (fan_in, fan_out), jnp.float32, -w_bound, w_bound)
        b = jax.random.uniform(kb, (1, fan_out), jnp.float32, -bound, bound)
        return w, b

    w1, b1 = linear(ks[0], ks[1], input_size, HIDDEN)
    w2, b2 = linear(ks[2], ks[3], HIDDEN, HIDDEN)
    w3, b3 = linear(ks[4], ks[5], HIDDEN, HIDDEN)
    # lin4.weight.data.uniform_(-0.01, 0.01); bias keeps default init
    w4, b4 = linear(ks[6], ks[7], HIDDEN, output_size, w_scale=0.01)

    ones = jnp.ones((1, HIDDEN), jnp.float32)
    zeros = jnp.zeros((1, HIDDEN), jnp.float32)
    return {
        "w1": w1, "b1": b1, "g1": ones, "be1": zeros,
        "w2": w2, "b2": b2, "g2": ones, "be2": zeros,
        "w3": w3, "b3": b3, "g3": ones, "be3": zeros,
        "w4": w4, "b4": b4,
    }


def _reference_forward(x, params, action_space_high):
    """Pure-JAX reference mirroring the kernel's bf16 MXU-input quantization."""
    def ln(y):
        mu = jnp.mean(y, axis=-1, keepdims=True)
        var = jnp.mean((y - mu) ** 2, axis=-1, keepdims=True)
        return (y - mu) * jax.lax.rsqrt(var + LN_EPS)

    h = x
    for i in (1, 2, 3):
        w = params[f"w{i}"].astype(jnp.bfloat16)
        h = jnp.dot(h.astype(jnp.bfloat16), w,
                    preferred_element_type=jnp.float32) + params[f"b{i}"]
        h = ln(h) * params[f"g{i}"] + params[f"be{i}"]
        h = jnp.maximum(h, 0.0)
    w4 = params["w4"].astype(jnp.bfloat16)
    y = jnp.dot(h.astype(jnp.bfloat16), w4,
                preferred_element_type=jnp.float32) + params["b4"]
    ah = jnp.asarray(action_space_high, jnp.float32).reshape(1, -1)
    return jnp.tanh(y) * ah


if __name__ == "__main__":
    key = jax.random.PRNGKey(0)
    k_param, k_x = jax.random.split(key)

    input_size = 8      # observation dim
    output_size = 4     # action dim
    batch = 2
    action_space_high = [2.0, 2.0, 2.0, 2.0]

    params = init_params(k_param, input_size, output_size)
    prepared = prepare_params(params, action_space_high)   # one-time pad/cast
    x = jax.random.normal(k_x, (batch, input_size), jnp.float32)

    out = ddpg_actor_forward(x, prepared)
    out = jax.block_until_ready(out)

    ref = _reference_forward(x, params, action_space_high)
    assert out.shape == (batch, output_size)
    assert jnp.allclose(out, ref, atol=1e-3, rtol=1e-3), (
        f"max abs diff = {jnp.max(jnp.abs(out - ref))}")

    print("KERNEL_OK")
</pallas_src>

<mosaic_0001>
module attributes {stable_mosaic.version = 11 : i64} {
  func.func @_ddpg_actor_kernel(%arg0: i32, %arg1: memref<16x8xbf16, #tpu.memory_space<vmem>>, %arg2: memref<8x256xbf16, #tpu.memory_space<vmem>>, %arg3: memref<1x256xf32, #tpu.memory_space<vmem>>, %arg4: memref<1x256xbf16, #tpu.memory_space<vmem>>, %arg5: memref<1x256xbf16, #tpu.memory_space<vmem>>, %arg6: memref<256x256xbf16, #tpu.memory_space<vmem>>, %arg7: memref<1x256xf32, #tpu.memory_space<vmem>>, %arg8: memref<1x256xbf16, #tpu.memory_space<vmem>>, %arg9: memref<1x256xbf16, #tpu.memory_space<vmem>>, %arg10: memref<256x256xbf16, #tpu.memory_space<vmem>>, %arg11: memref<1x256xf32, #tpu.memory_space<vmem>>, %arg12: memref<1x256xbf16, #tpu.memory_space<vmem>>, %arg13: memref<1x256xbf16, #tpu.memory_space<vmem>>, %arg14: memref<256x128xbf16, #tpu.memory_space<vmem>>, %arg15: memref<1x128xf32, #tpu.memory_space<vmem>>, %arg16: memref<1x128xf32, #tpu.memory_space<vmem>>, %arg17: memref<16x128xf32, #tpu.memory_space<vmem>>) attributes {dimension_semantics = [#tpu.dimension_semantics<parallel>], iteration_bounds = array<i64: 1>, scalar_prefetch = 0 : i64, scratch_operands = 0 : i64, tpu.core_type = #tpu.core_type<tc>, window_params = [{transform_indices = @transform_0, window_bounds = array<i64: 16, 8>}, {pipeline_mode = #tpu.pipeline_mode<synchronous>, transform_indices = @transform_1, window_bounds = array<i64: 8, 256>}, {pipeline_mode = #tpu.pipeline_mode<synchronous>, transform_indices = @transform_2, window_bounds = array<i64: 1, 256>}, {pipeline_mode = #tpu.pipeline_mode<synchronous>, transform_indices = @transform_3, window_bounds = array<i64: 1, 256>}, {pipeline_mode = #tpu.pipeline_mode<synchronous>, transform_indices = @transform_4, window_bounds = array<i64: 1, 256>}, {pipeline_mode = #tpu.pipeline_mode<synchronous>, transform_indices = @transform_5, window_bounds = array<i64: 256, 256>}, {pipeline_mode = #tpu.pipeline_mode<synchronous>, transform_indices = @transform_6, window_bounds = array<i64: 1, 256>}, {pipeline_mode = #tpu.pipeline_mode<synchronous>, transform_indices = @transform_7, window_bounds = array<i64: 1, 256>}, {pipeline_mode = #tpu.pipeline_mode<synchronous>, transform_indices = @transform_8, window_bounds = array<i64: 1, 256>}, {pipeline_mode = #tpu.pipeline_mode<synchronous>, transform_indices = @transform_9, window_bounds = array<i64: 256, 256>}, {pipeline_mode = #tpu.pipeline_mode<synchronous>, transform_indices = @transform_10, window_bounds = array<i64: 1, 256>}, {pipeline_mode = #tpu.pipeline_mode<synchronous>, transform_indices = @transform_11, window_bounds = array<i64: 1, 256>}, {pipeline_mode = #tpu.pipeline_mode<synchronous>, transform_indices = @transform_12, window_bounds = array<i64: 1, 256>}, {pipeline_mode = #tpu.pipeline_mode<synchronous>, transform_indices = @transform_13, window_bounds = array<i64: 256, 128>}, {pipeline_mode = #tpu.pipeline_mode<synchronous>, transform_indices = @transform_14, window_bounds = array<i64: 1, 128>}, {pipeline_mode = #tpu.pipeline_mode<synchronous>, transform_indices = @transform_15, window_bounds = array<i64: 1, 128>}, {transform_indices = @transform_16, window_bounds = array<i64: 16, 128>}]} {
    %c0 = arith.constant 0 : index
    %c0_0 = arith.constant 0 : index
    %0 = vector.load %arg1[%c0, %c0_0] : memref<16x8xbf16, #tpu.memory_space<vmem>>, vector<16x8xbf16>
    %c0_1 = arith.constant 0 : index
    %c0_2 = arith.constant 0 : index
    %1 = vector.load %arg2[%c0_1, %c0_2] : memref<8x256xbf16, #tpu.memory_space<vmem>>, vector<8x256xbf16>
    %cst = arith.constant dense<0.000000e+00> : vector<16x256xf32>
    %2 = tpu.matmul %0, %1, %cst {dimension_numbers = #tpu.dot_dimension_numbers<[1], [0], [0], [1], [0, 0, 1, 1], [], []>} : vector<16x8xbf16>, vector<8x256xbf16>, vector<16x256xf32> -> vector<16x256xf32>
    %c0_3 = arith.constant 0 : index
    %c0_4 = arith.constant 0 : index
    %3 = vector.load %arg3[%c0_3, %c0_4] : memref<1x256xf32, #tpu.memory_space<vmem>>, vector<1x256xf32>
    %4 = vector.broadcast %3 : vector<1x256xf32> to vector<16x256xf32>
    %5 = arith.addf %2, %4 : vector<16x256xf32>
    %cst_5 = arith.constant dense<0.000000e+00> : vector<16xf32>
    %6 = vector.multi_reduction <add>, %5, %cst_5 [1] : vector<16x256xf32> to vector<16xf32>
    %7 = vector.shape_cast %6 : vector<16xf32> to vector<16x1xf32>
    %cst_6 = arith.constant 2.560000e+02 : f32
    %8 = vector.broadcast %cst_6 : f32 to vector<16x1xf32>
    %9 = arith.divf %7, %8 : vector<16x1xf32>
    %10 = vector.broadcast %9 : vector<16x1xf32> to vector<16x256xf32>
    %11 = arith.subf %5, %10 : vector<16x256xf32>
    %12 = arith.mulf %11, %11 : vector<16x256xf32>
    %cst_7 = arith.constant dense<0.000000e+00> : vector<16xf32>
    %13 = vector.multi_reduction <add>, %12, %cst_7 [1] : vector<16x256xf32> to vector<16xf32>
    %14 = vector.shape_cast %13 : vector<16xf32> to vector<16x1xf32>
    %cst_8 = arith.constant 2.560000e+02 : f32
    %15 = vector.broadcast %cst_8 : f32 to vector<16x1xf32>
    %16 = arith.divf %14, %15 : vector<16x1xf32>
    %cst_9 = arith.constant 9.99999974E-6 : f32
    %17 = vector.broadcast %cst_9 : f32 to vector<16x1xf32>
    %18 = arith.addf %16, %17 : vector<16x1xf32>
    %19 = math.rsqrt %18 : vector<16x1xf32>
    %20 = vector.broadcast %19 : vector<16x1xf32> to vector<16x256xf32>
    %21 = arith.mulf %11, %20 : vector<16x256xf32>
    %c0_10 = arith.constant 0 : index
    %c0_11 = arith.constant 0 : index
    %22 = vector.load %arg4[%c0_10, %c0_11] : memref<1x256xbf16, #tpu.memory_space<vmem>>, vector<1x256xbf16>
    %23 = arith.truncf %21 : vector<16x256xf32> to vector<16x256xbf16>
    %24 = vector.broadcast %22 : vector<1x256xbf16> to vector<16x256xbf16>
    %25 = arith.mulf %23, %24 : vector<16x256xbf16>
    %c0_12 = arith.constant 0 : index
    %c0_13 = arith.constant 0 : index
    %26 = vector.load %arg5[%c0_12, %c0_13] : memref<1x256xbf16, #tpu.memory_space<vmem>>, vector<1x256xbf16>
    %27 = vector.broadcast %26 : vector<1x256xbf16> to vector<16x256xbf16>
    %28 = arith.addf %25, %27 : vector<16x256xbf16>
    %cst_14 = arith.constant 0.000000e+00 : bf16
    %29 = vector.broadcast %cst_14 : bf16 to vector<16x256xbf16>
    %30 = arith.maximumf %28, %29 : vector<16x256xbf16>
    %c0_15 = arith.constant 0 : index
    %c0_16 = arith.constant 0 : index
    %31 = vector.load %arg6[%c0_15, %c0_16] : memref<256x256xbf16, #tpu.memory_space<vmem>>, vector<256x256xbf16>
    %cst_17 = arith.constant dense<0.000000e+00> : vector<16x256xf32>
    %32 = tpu.matmul %30, %31, %cst_17 {dimension_numbers = #tpu.dot_dimension_numbers<[1], [0], [0], [1], [0, 0, 1, 1], [], []>} : vector<16x256xbf16>, vector<256x256xbf16>, vector<16x256xf32> -> vector<16x256xf32>
    %c0_18 = arith.constant 0 : index
    %c0_19 = arith.constant 0 : index
    %33 = vector.load %arg7[%c0_18, %c0_19] : memref<1x256xf32, #tpu.memory_space<vmem>>, vector<1x256xf32>
    %34 = vector.broadcast %33 : vector<1x256xf32> to vector<16x256xf32>
    %35 = arith.addf %32, %34 : vector<16x256xf32>
    %cst_20 = arith.constant dense<0.000000e+00> : vector<16xf32>
    %36 = vector.multi_reduction <add>, %35, %cst_20 [1] : vector<16x256xf32> to vector<16xf32>
    %37 = vector.shape_cast %36 : vector<16xf32> to vector<16x1xf32>
    %cst_21 = arith.constant 2.560000e+02 : f32
    %38 = vector.broadcast %cst_21 : f32 to vector<16x1xf32>
    %39 = arith.divf %37, %38 : vector<16x1xf32>
    %40 = vector.broadcast %39 : vector<16x1xf32> to vector<16x256xf32>
    %41 = arith.subf %35, %40 : vector<16x256xf32>
    %42 = arith.mulf %41, %41 : vector<16x256xf32>
    %cst_22 = arith.constant dense<0.000000e+00> : vector<16xf32>
    %43 = vector.multi_reduction <add>, %42, %cst_22 [1] : vector<16x256xf32> to vector<16xf32>
    %44 = vector.shape_cast %43 : vector<16xf32> to vector<16x1xf32>
    %cst_23 = arith.constant 2.560000e+02 : f32
    %45 = vector.broadcast %cst_23 : f32 to vector<16x1xf32>
    %46 = arith.divf %44, %45 : vector<16x1xf32>
    %cst_24 = arith.constant 9.99999974E-6 : f32
    %47 = vector.broadcast %cst_24 : f32 to vector<16x1xf32>
    %48 = arith.addf %46, %47 : vector<16x1xf32>
    %49 = math.rsqrt %48 : vector<16x1xf32>
    %50 = vector.broadcast %49 : vector<16x1xf32> to vector<16x256xf32>
    %51 = arith.mulf %41, %50 : vector<16x256xf32>
    %c0_25 = arith.constant 0 : index
    %c0_26 = arith.constant 0 : index
    %52 = vector.load %arg8[%c0_25, %c0_26] : memref<1x256xbf16, #tpu.memory_space<vmem>>, vector<1x256xbf16>
    %53 = arith.truncf %51 : vector<16x256xf32> to vector<16x256xbf16>
    %54 = vector.broadcast %52 : vector<1x256xbf16> to vector<16x256xbf16>
    %55 = arith.mulf %53, %54 : vector<16x256xbf16>
    %c0_27 = arith.constant 0 : index
    %c0_28 = arith.constant 0 : index
    %56 = vector.load %arg9[%c0_27, %c0_28] : memref<1x256xbf16, #tpu.memory_space<vmem>>, vector<1x256xbf16>
    %57 = vector.broadcast %56 : vector<1x256xbf16> to vector<16x256xbf16>
    %58 = arith.addf %55, %57 : vector<16x256xbf16>
    %cst_29 = arith.constant 0.000000e+00 : bf16
    %59 = vector.broadcast %cst_29 : bf16 to vector<16x256xbf16>
    %60 = arith.maximumf %58, %59 : vector<16x256xbf16>
    %c0_30 = arith.constant 0 : index
    %c0_31 = arith.constant 0 : index
    %61 = vector.load %arg10[%c0_30, %c0_31] : memref<256x256xbf16, #tpu.memory_space<vmem>>, vector<256x256xbf16>
    %cst_32 = arith.constant dense<0.000000e+00> : vector<16x256xf32>
    %62 = tpu.matmul %60, %61, %cst_32 {dimension_numbers = #tpu.dot_dimension_numbers<[1], [0], [0], [1], [0, 0, 1, 1], [], []>} : vector<16x256xbf16>, vector<256x256xbf16>, vector<16x256xf32> -> vector<16x256xf32>
    %c0_33 = arith.constant 0 : index
    %c0_34 = arith.constant 0 : index
    %63 = vector.load %arg11[%c0_33, %c0_34] : memref<1x256xf32, #tpu.memory_space<vmem>>, vector<1x256xf32>
    %64 = vector.broadcast %63 : vector<1x256xf32> to vector<16x256xf32>
    %65 = arith.addf %62, %64 : vector<16x256xf32>
    %cst_35 = arith.constant dense<0.000000e+00> : vector<16xf32>
    %66 = vector.multi_reduction <add>, %65, %cst_35 [1] : vector<16x256xf32> to vector<16xf32>
    %67 = vector.shape_cast %66 : vector<16xf32> to vector<16x1xf32>
    %cst_36 = arith.constant 2.560000e+02 : f32
    %68 = vector.broadcast %cst_36 : f32 to vector<16x1xf32>
    %69 = arith.divf %67, %68 : vector<16x1xf32>
    %70 = vector.broadcast %69 : vector<16x1xf32> to vector<16x256xf32>
    %71 = arith.subf %65, %70 : vector<16x256xf32>
    %72 = arith.mulf %71, %71 : vector<16x256xf32>
    %cst_37 = arith.constant dense<0.000000e+00> : vector<16xf32>
    %73 = vector.multi_reduction <add>, %72, %cst_37 [1] : vector<16x256xf32> to vector<16xf32>
    %74 = vector.shape_cast %73 : vector<16xf32> to vector<16x1xf32>
    %cst_38 = arith.constant 2.560000e+02 : f32
    %75 = vector.broadcast %cst_38 : f32 to vector<16x1xf32>
    %76 = arith.divf %74, %75 : vector<16x1xf32>
    %cst_39 = arith.constant 9.99999974E-6 : f32
    %77 = vector.broadcast %cst_39 : f32 to vector<16x1xf32>
    %78 = arith.addf %76, %77 : vector<16x1xf32>
    %79 = math.rsqrt %78 : vector<16x1xf32>
    %80 = vector.broadcast %79 : vector<16x1xf32> to vector<16x256xf32>
    %81 = arith.mulf %71, %80 : vector<16x256xf32>
    %c0_40 = arith.constant 0 : index
    %c0_41 = arith.constant 0 : index
    %82 = vector.load %arg12[%c0_40, %c0_41] : memref<1x256xbf16, #tpu.memory_space<vmem>>, vector<1x256xbf16>
    %83 = arith.truncf %81 : vector<16x256xf32> to vector<16x256xbf16>
    %84 = vector.broadcast %82 : vector<1x256xbf16> to vector<16x256xbf16>
    %85 = arith.mulf %83, %84 : vector<16x256xbf16>
    %c0_42 = arith.constant 0 : index
    %c0_43 = arith.constant 0 : index
    %86 = vector.load %arg13[%c0_42, %c0_43] : memref<1x256xbf16, #tpu.memory_space<vmem>>, vector<1x256xbf16>
    %87 = vector.broadcast %86 : vector<1x256xbf16> to vector<16x256xbf16>
    %88 = arith.addf %85, %87 : vector<16x256xbf16>
    %cst_44 = arith.constant 0.000000e+00 : bf16
    %89 = vector.broadcast %cst_44 : bf16 to vector<16x256xbf16>
    %90 = arith.maximumf %88, %89 : vector<16x256xbf16>
    %c0_45 = arith.constant 0 : index
    %c0_46 = arith.constant 0 : index
    %91 = vector.load %arg14[%c0_45, %c0_46] : memref<256x128xbf16, #tpu.memory_space<vmem>>, vector<256x128xbf16>
    %cst_47 = arith.constant dense<0.000000e+00> : vector<16x128xf32>
    %92 = tpu.matmul %90, %91, %cst_47 {dimension_numbers = #tpu.dot_dimension_numbers<[1], [0], [0], [1], [0, 0, 1, 1], [], []>} : vector<16x256xbf16>, vector<256x128xbf16>, vector<16x128xf32> -> vector<16x128xf32>
    %c0_48 = arith.constant 0 : index
    %c0_49 = arith.constant 0 : index
    %93 = vector.load %arg15[%c0_48, %c0_49] : memref<1x128xf32, #tpu.memory_space<vmem>>, vector<1x128xf32>
    %94 = vector.broadcast %93 : vector<1x128xf32> to vector<16x128xf32>
    %95 = arith.addf %92, %94 : vector<16x128xf32>
    %96 = math.tanh %95 : vector<16x128xf32>
    %c0_50 = arith.constant 0 : index
    %c0_51 = arith.constant 0 : index
    %97 = vector.load %arg16[%c0_50, %c0_51] : memref<1x128xf32, #tpu.memory_space<vmem>>, vector<1x128xf32>
    %98 = vector.broadcast %97 : vector<1x128xf32> to vector<16x128xf32>
    %99 = arith.mulf %96, %98 : vector<16x128xf32>
    %c0_52 = arith.constant 0 : index
    %c0_53 = arith.constant 0 : index
    %100 = vector.load %arg17[%c0_52, %c0_53] : memref<16x128xf32, #tpu.memory_space<vmem>>, vector<16x128xf32>
    tpu.vector_store %arg17[%c0_52, %c0_53], %99 {strides = array<i32>} : memref<16x128xf32, #tpu.memory_space<vmem>>, vector<16x128xf32>,
    return
  }
  func.func @transform_0(%arg0: i32) -> (i32, i32) {
    %c0_i32 = arith.constant 0 : i32
    %c0_i32_0 = arith.constant 0 : i32
    return %arg0, %c0_i32 : i32, i32
  }
  func.func @transform_1(%arg0: i32) -> (i32, i32) {
    %c0_i32 = arith.constant 0 : i32
    %c0_i32_0 = arith.constant 0 : i32
    %c0_i32_1 = arith.constant 0 : i32
    return %c0_i32, %c0_i32_0 : i32, i32
  }
  func.func @transform_2(%arg0: i32) -> (i32, i32) {
    %c0_i32 = arith.constant 0 : i32
    %c0_i32_0 = arith.constant 0 : i32
    %c0_i32_1 = arith.constant 0 : i32
    return %c0_i32, %c0_i32_0 : i32, i32
  }
  func.func @transform_3(%arg0: i32) -> (i32, i32) {
    %c0_i32 = arith.constant 0 : i32
    %c0_i32_0 = arith.constant 0 : i32
    %c0_i32_1 = arith.constant 0 : i32
    return %c0_i32, %c0_i32_0 : i32, i32
  }
  func.func @transform_4(%arg0: i32) -> (i32, i32) {
    %c0_i32 = arith.constant 0 : i32
    %c0_i32_0 = arith.constant 0 : i32
    %c0_i32_1 = arith.constant 0 : i32
    return %c0_i32, %c0_i32_0 : i32, i32
  }
  func.func @transform_5(%arg0: i32) -> (i32, i32) {
    %c0_i32 = arith.constant 0 : i32
    %c0_i32_0 = arith.constant 0 : i32
    %c0_i32_1 = arith.constant 0 : i32
    return %c0_i32, %c0_i32_0 : i32, i32
  }
  func.func @transform_6(%arg0: i32) -> (i32, i32) {
    %c0_i32 = arith.constant 0 : i32
    %c0_i32_0 = arith.constant 0 : i32
    %c0_i32_1 = arith.constant 0 : i32
    return %c0_i32, %c0_i32_0 : i32, i32
  }
  func.func @transform_7(%arg0: i32) -> (i32, i32) {
    %c0_i32 = arith.constant 0 : i32
    %c0_i32_0 = arith.constant 0 : i32
    %c0_i32_1 = arith.constant 0 : i32
    return %c0_i32, %c0_i32_0 : i32, i32
  }
  func.func @transform_8(%arg0: i32) -> (i32, i32) {
    %c0_i32 = arith.constant 0 : i32
    %c0_i32_0 = arith.constant 0 : i32
    %c0_i32_1 = arith.constant 0 : i32
    return %c0_i32, %c0_i32_0 : i32, i32
  }
  func.func @transform_9(%arg0: i32) -> (i32, i32) {
    %c0_i32 = arith.constant 0 : i32
    %c0_i32_0 = arith.constant 0 : i32
    %c0_i32_1 = arith.constant 0 : i32
    return %c0_i32, %c0_i32_0 : i32, i32
  }
  func.func @transform_10(%arg0: i32) -> (i32, i32) {
    %c0_i32 = arith.constant 0 : i32
    %c0_i32_0 = arith.constant 0 : i32
    %c0_i32_1 = arith.constant 0 : i32
    return %c0_i32, %c0_i32_0 : i32, i32
  }
  func.func @transform_11(%arg0: i32) -> (i32, i32) {
    %c0_i32 = arith.constant 0 : i32
    %c0_i32_0 = arith.constant 0 : i32
    %c0_i32_1 = arith.constant 0 : i32
    return %c0_i32, %c0_i32_0 : i32, i32
  }
  func.func @transform_12(%arg0: i32) -> (i32, i32) {
    %c0_i32 = arith.constant 0 : i32
    %c0_i32_0 = arith.constant 0 : i32
    %c0_i32_1 = arith.constant 0 : i32
    return %c0_i32, %c0_i32_0 : i32, i32
  }
  func.func @transform_13(%arg0: i32) -> (i32, i32) {
    %c0_i32 = arith.constant 0 : i32
    %c0_i32_0 = arith.constant 0 : i32
    %c0_i32_1 = arith.constant 0 : i32
    return %c0_i32, %c0_i32_0 : i32, i32
  }
  func.func @transform_14(%arg0: i32) -> (i32, i32) {
    %c0_i32 = arith.constant 0 : i32
    %c0_i32_0 = arith.constant 0 : i32
    %c0_i32_1 = arith.constant 0 : i32
    return %c0_i32, %c0_i32_0 : i32, i32
  }
  func.func @transform_15(%arg0: i32) -> (i32, i32) {
    %c0_i32 = arith.constant 0 : i32
    %c0_i32_0 = arith.constant 0 : i32
    %c0_i32_1 = arith.constant 0 : i32
    return %c0_i32, %c0_i32_0 : i32, i32
  }
  func.func @transform_16(%arg0: i32) -> (i32, i32) {
    %c0_i32 = arith.constant 0 : i32
    %c0_i32_0 = arith.constant 0 : i32
    return %arg0, %c0_i32 : i32, i32
  }
}

</mosaic_0001>

<bundles_post_ra>
// kernel: tpu_custom_call.1
= control target key start
LH: loop header
LB: loop body
LE: loop exit
PB: predicated region body
PF: predicated region fallthrough
CT: control target
= control target key end

     0   :  { %s1881_s0 = inlined_call_operand.vmem [shape: bf16[16,8], index: 0, kind: input, shape index: {}]   ;;  %s1882_s1 = inlined_call_operand.vmem [shape: bf16[8,256], index: 1, kind: input, shape index: {}]   ;;  %s1883_s2 = inlined_call_operand.vmem [shape: f32[1,256], index: 2, kind: input, shape index: {}]   ;;  %s1884_s3 = inlined_call_operand.vmem [shape: bf16[1,256], index: 3, kind: input, shape index: {}]   ;;  %s1885_s4 = inlined_call_operand.vmem [shape: bf16[1,256], index: 4, kind: input, shape index: {}]   ;;  %s1886_s5 = inlined_call_operand.hbm [shape: bf16[256,256], index: 5, kind: input, shape index: {}]   ;;  %s1887_s6 = inlined_call_operand.vmem [shape: f32[1,256], index: 6, kind: input, shape index: {}]   ;;  %s1888_s7 = inlined_call_operand.vmem [shape: bf16[1,256], index: 7, kind: input, shape index: {}]   ;;  %s1889_s8 = inlined_call_operand.vmem [shape: bf16[1,256], index: 8, kind: input, shape index: {}]   ;;  %s1890_s9 = inlined_call_operand.hbm [shape: bf16[256,256], index: 9, kind: input, shape index: {}]   ;;  %s1891_s10 = inlined_call_operand.vmem [shape: f32[1,256], index: 10, kind: input, shape index: {}]   ;;  %s1892_s11 = inlined_call_operand.vmem [shape: bf16[1,256], index: 11, kind: input, shape index: {}]   ;;  %s1893_s12 = inlined_call_operand.vmem [shape: bf16[1,256], index: 12, kind: input, shape index: {}]   ;;  %s1894_s13 = inlined_call_operand.hbm [shape: bf16[256,128], index: 13, kind: input, shape index: {}]   ;;  %s1895_s14 = inlined_call_operand.vmem [shape: f32[1,128], index: 14, kind: input, shape index: {}]   ;;  %s1896_s15 = inlined_call_operand.vmem [shape: f32[1,128], index: 15, kind: input, shape index: {}]   ;;  %s1897_s16 = inlined_call_operand.hbm [shape: f32[16,128], index: 16, kind: output, shape index: {}]  }
   0x1   :  { %1898 = sst [smem:[#allocation12_spill]] %s1881_s0 }
   0x2   :  { %21 = vsyncpa [#allocation3], 0 }
   0x3   :  { %22 = vsyncpa [#allocation6], 0 }
   0x4   :  { %23 = vsyncpa [#allocation4], 0  ;;  %s1575_s21 = smov [#allocation5]   ;;  %s1576_s23 = smov [#allocation2]  }
   0x5   :  { %s57_s22 = sshll.u32 %s1575_s21, 4  ;;  %s39_s24 = sshll.u32 %s1576_s23, 4  ;;  %s58_s22 = int_to_ptr.vmem [resolvable:$true] %s57_s22  ;;  %s1670_s24 = int_to_ptr.vmem [resolvable:$true] %s39_s24 }
   0x6   :  { %s1481_s27 = scalar_lea.hbm %s1890_s9, 4096 }
   0x7   :  { %p1482_p0 = scmp.ne.s32.totalorder %s1890_s9, %s1481_s27  ;;  %p1485_p1 = scmp.lt.u32.totalorder %s1481_s27, %s1890_s9 }
   0x9   :  { %p1487_p2 = pnand %p1485_p1, %p1482_p0 }
   0xb   :  { %1490 = shalt.err (!%p1487_p2)
}
   0xc   :  { %s1491_s17 = scalar_lea.vmem %s58_s22, 4096  ;;  %p1496_p4 = scmp.lt.s32.totalorder %s58_s22, %s58_s22 }
   0xd   :  { %p1492_p3 = scmp.ne.s32.totalorder %s58_s22, %s1491_s17  ;;  %p1497_p5 = scmp.lt.s32.totalorder %s1491_s17, %s1491_s17 }
   0xf   :  { %p1498_p6 = por %p1497_p5, %p1496_p4 }
  0x11   :  { %p1499_p7 = pnand %p1498_p6, %p1492_p3 }
  0x13   :  { %1502 = shalt.err (!%p1499_p7)
}
  0x14   :  { %s1577_s18 = smov 128   ;;  %s1578_s19 = smov 8  }
  0x15   :  { %63 = dma.hbm_to_vmem [thread:$0]  %s1890_s9, 4096, %s58_s22, [#allocation6], %s1577_s18, %s1577_s18, %s1578_s19  }
  0x16   :  { %s1503_s26 = scalar_lea.hbm %s1886_s5, 4096 }
  0x17   :  { %p1504_p8 = scmp.ne.s32.totalorder %s1886_s5, %s1503_s26  ;;  %p1507_p9 = scmp.lt.u32.totalorder %s1503_s26, %s1886_s5 }
  0x19   :  { %p1509_p10 = pnand %p1507_p9, %p1504_p8 }
  0x1b   :  { %1512 = shalt.err (!%p1509_p10)
}
  0x1c   :  { %s1513_s0 = scalar_lea.vmem %s1670_s24, 4096  ;;  %p1518_p12 = scmp.lt.s32.totalorder %s1670_s24, %s1670_s24 }
  0x1d   :  { %p1514_p11 = scmp.ne.s32.totalorder %s1670_s24, %s1513_s0  ;;  %p1519_p13 = scmp.lt.s32.totalorder %s1513_s0, %s1513_s0 }
  0x1f   :  { %p1520_p0 = por %p1519_p13, %p1518_p12 }
  0x21   :  { %p1521_p1 = pnand %p1520_p0, %p1514_p11 }
  0x23   :  { %1524 = shalt.err (!%p1521_p1)
}
  0x24   :  { %45 = dma.hbm_to_vmem [thread:$0]  %s1886_s5, 4096, %s1670_s24, [#allocation3], %s1577_s18, %s1577_s18, %s1578_s19  }
  0x25   :  { %s1579_s17 = smov [#allocation7]   ;;  %s1525_s25 = scalar_lea.hbm %s1894_s13, 2048 }
  0x26   :  { %s75_s20 = sshll.u32 %s1579_s17, 4  ;;  %p1526_p2 = scmp.ne.s32.totalorder %s1894_s13, %s1525_s25  ;;  %s76_s20 = int_to_ptr.vmem [resolvable:$true] %s75_s20 }
  0x27   :  { %p1529_p3 = scmp.lt.u32.totalorder %s1525_s25, %s1894_s13 }
  0x29   :  { %p1531_p4 = pnand %p1529_p3, %p1526_p2 }
  0x2b   :  { %1534 = shalt.err (!%p1531_p4)
}
  0x2c   :  { %s1535_s30 = scalar_lea.vmem %s76_s20, 2048  ;;  %p1540_p6 = scmp.lt.s32.totalorder %s76_s20, %s76_s20 }
  0x2d   :  { %p1536_p5 = scmp.ne.s32.totalorder %s76_s20, %s1535_s30  ;;  %p1541_p7 = scmp.lt.s32.totalorder %s1535_s30, %s1535_s30 }
  0x2f   :  { %p1542_p8 = por %p1541_p7, %p1540_p6 }
  0x31   :  { %p1543_p9 = pnand %p1542_p8, %p1536_p5 }
  0x33   :  { %1546 = shalt.err (!%p1543_p9)
}
  0x34   :  { %s1580_s5 = smov 64   ;;  %s1581_s24 = smov 4  }
  0x35   :  { %81 = dma.hbm_to_vmem [thread:$0]  %s1894_s13, 2048, %s76_s20, [#allocation6], %s1580_s5, %s1580_s5, %s1581_s24  }
  0x36   :  { %1569 = dma.done.wait [#allocation3], 4096  }
  0x37   :  { %1570 = vsyncadd [#allocation3], 4294963200 }
  0x38   :  { %1571 = dma.done.wait [#allocation6], 6144  }
  0x39   :  { %1572 = vsyncadd [#allocation6], 4294961152  ;;  %v1582_v0 = vmov 0   ;;  %v98_v1 = vld [vmem:[%s1882_s1] sm:$0xff]  ;;  %vm125_vm0 = vcmask 1043456   ;;  %s1899_s25 = sld [smem:[#allocation12_spill]]  ;;  %v101_v6 = vlaneseq }
  0x3a   :  { %164 = vmatprep.mubr.bf16.mxu0 %v1582_v0  ;;  %v1227_v2 = vcombine.high %v98_v1, %v98_v1  ;;  %v1226_v3 = vcombine.low %v98_v1, %v98_v1  ;;  %vm121_vm1 = vcmask 64512   ;;  %v99_v9 = vld [vmem:[%s1883_s2] sm:$0x3]  ;;  %v1353_v23 = vld [vmem:[#allocation2 + $0x4] ss:$8 sps:$4 sm:$0xff]   ;;  %s1584_s17 = smov [#allocation8]  }
  0x3b   :  { %v1726_v7 = vshrl.u32 %v101_v6, 7  ;;  %v1355_v24 = vld [vmem:[#allocation2] ss:$8 sps:$4 sm:$0xff]   ;;  %v1356_v25 = vld [vmem:[#allocation2 + $0x14] ss:$8 sps:$4 sm:$0xff]   ;;  %496 = vmatprep.subr.bf16.mxu1 %v1353_v23  ;;  %s1212_s21 = sshll.u32 %s1584_s17, 4  ;;  %s1213_s21 = int_to_ptr.vmem [resolvable:$true] %s1212_s21 }
  0x3c   :  { %1228 = vmatprep.subr.msk.bf16.mxu0 %vm125_vm0, %v1227_v2  ;;  %v127_v5 = vsel %vm125_vm0, %v1226_v3, 0  ;;  %497 = vmatpush1.bf16.msra.mxu1 %v1355_v24  ;;  %v1358_v26 = vld [vmem:[#allocation2 + $0x10] ss:$8 sps:$4 sm:$0xff]   ;;  %v1359_v27 = vld [vmem:[#allocation2 + $0x24] ss:$8 sps:$4 sm:$0xff]   ;;  %p1552_p11 = scmp.lt.s32.totalorder %s1213_s21, %s1213_s21 }
  0x3d   :  { %133 = vmatpush1.bf16.msra.mxu0 %v127_v5  ;;  %v1729_v8 = vsub.s32 0, %v1726_v7  ;;  %v1735_v10 = vsub.s32 1, %v1726_v7  ;;  %498 = vmatprep.subr.bf16.mxu1 %v1356_v25  ;;  %v1361_v28 = vld [vmem:[#allocation2 + $0x20] ss:$8 sps:$4 sm:$0xff]   ;;  %v1362_v29 = vld [vmem:[#allocation2 + $0x34] ss:$8 sps:$4 sm:$0xff]  }
  0x3e   :  { %v1364_v30 = vld [vmem:[#allocation2 + $0x30] ss:$8 sps:$4 sm:$0xff]   ;;  %v1365_v31 = vld [vmem:[#allocation2 + $0x44] ss:$8 sps:$4 sm:$0xff]   ;;  %v1367_v32 = vld [vmem:[#allocation2 + $0x40] ss:$8 sps:$4 sm:$0xff]  }
  0x3f   :  { %v1352_v4 = vld [vmem:[%s1899_s25] sm:$0xff]   ;;  %v104_v11 = vrot.slane %v99_v9, %v1729_v8  ;;  %v108_v12 = vrot.slane %v99_v9, %v1735_v10  ;;  %v1371_v35 = vld [vmem:[#allocation2 + $0x64] ss:$8 sps:$4 sm:$0xff]   ;;  %v1373_v36 = vld [vmem:[#allocation2 + $0x60] ss:$8 sps:$4 sm:$0xff]  }
  0x40   :  { %1229 = vmatmul.mubr.msk.bf16.vlgmr.msra.gmra.mrb[0].mxu0 %vm121_vm1, %v1352_v4  ;;  %499 = vmatpush1.bf16.msra.mxu1 %v1358_v26  ;;  %v1368_v33 = vld [vmem:[#allocation2 + $0x54] ss:$8 sps:$4 sm:$0xff]   ;;  %v1370_v34 = vld [vmem:[#allocation2 + $0x50] ss:$8 sps:$4 sm:$0xff]   ;;  %v1377_v39 = vld [vmem:[#allocation2 + $0x84] ss:$8 sps:$4 sm:$0xff]  }
  0x41   :  { %500 = vmatprep.subr.bf16.mxu1 %v1359_v27  ;;  %v1374_v37 = vld [vmem:[#allocation2 + $0x74] ss:$8 sps:$4 sm:$0xff]   ;;  %v1376_v38 = vld [vmem:[#allocation2 + $0x70] ss:$8 sps:$4 sm:$0xff]   ;;  %v1379_v40 = vld [vmem:[#allocation2 + $0x80] ss:$8 sps:$4 sm:$0xff]  }
  0x42   :  { %v1380_v55 = vld [vmem:[#allocation2 + $0x94] ss:$8 sps:$4 sm:$0xff]   ;;  %v1382_v56 = vld [vmem:[#allocation2 + $0x90] ss:$8 sps:$4 sm:$0xff]   ;;  %v1383_v57 = vld [vmem:[#allocation2 + $0xa4] ss:$8 sps:$4 sm:$0xff]  }
  0x43   :  { %v1385_v58 = vld [vmem:[#allocation2 + $0xa0] ss:$8 sps:$4 sm:$0xff]   ;;  %v1386_v59 = vld [vmem:[#allocation2 + $0xb4] ss:$8 sps:$4 sm:$0xff]   ;;  %v1388_v60 = vld [vmem:[#allocation2 + $0xb0] ss:$8 sps:$4 sm:$0xff]  }
  0x44   :  { %501 = vmatpush1.bf16.msra.mxu1 %v1361_v28  ;;  %v1389_v61 = vld [vmem:[#allocation2 + $0xc4] ss:$8 sps:$4 sm:$0xff]   ;;  %v1391_v62 = vld [vmem:[#allocation2 + $0xc0] ss:$8 sps:$4 sm:$0xff]   ;;  %v1392_v63 = vld [vmem:[#allocation2 + $0xd4] ss:$8 sps:$4 sm:$0xff]  }
  0x45   :  { %502 = vmatprep.subr.bf16.mxu1 %v1362_v29  ;;  %v1394_v1 = vld [vmem:[#allocation2 + $0xd0] ss:$8 sps:$4 sm:$0xff]   ;;  %v1395_v2 = vld [vmem:[#allocation2 + $0xe4] ss:$8 sps:$4 sm:$0xff]   ;;  %v1397_v3 = vld [vmem:[#allocation2 + $0xe0] ss:$8 sps:$4 sm:$0xff]  }
  0x46   :  { %v1398_v4 = vld [vmem:[#allocation2 + $0xf4] ss:$8 sps:$4 sm:$0xff]   ;;  %v1400_v5 = vld [vmem:[#allocation2 + $0xf0] ss:$8 sps:$4 sm:$0xff]   ;;  %v1583_v6 = vmov 1966171168  }
  0x47   :  { %v221_v9 = vunpack.c.l.s4 %v1583_v6  ;;  %v1415_v6 = vld [vmem:[#allocation5 + $0x44] ss:$8 sps:$4 sm:$0xff]  }
  0x48   :  { %503 = vmatpush1.bf16.msra.mxu1 %v1364_v30 }
  0x49   :  { %504 = vmatprep.subr.bf16.mxu1 %v1365_v31 }
  0x4c   :  { %505 = vmatpush1.bf16.msra.mxu1 %v1367_v32 }
  0x4d   :  { %506 = vmatprep.subr.bf16.mxu1 %v1368_v33 }
  0x50   :  { %507 = vmatpush1.bf16.msra.mxu1 %v1370_v34 }
  0x51   :  { %508 = vmatprep.subr.bf16.mxu1 %v1371_v35 }
  0x54   :  { %509 = vmatpush1.bf16.msra.mxu1 %v1373_v36 }
  0x55   :  { %510 = vmatprep.subr.bf16.mxu1 %v1374_v37 }
  0x58   :  { %511 = vmatpush1.bf16.msra.mxu1 %v1376_v38 }
  0x59   :  { %512 = vmatprep.subr.bf16.mxu1 %v1377_v39 }
  0x5c   :  { %513 = vmatpush1.bf16.msra.mxu1 %v1379_v40 }
  0x5d   :  { %514 = vmatprep.subr.bf16.mxu1 %v1380_v55 }
  0x60   :  { %515 = vmatpush1.bf16.msra.mxu1 %v1382_v56 }
  0x61   :  { %516 = vmatprep.subr.bf16.mxu1 %v1383_v57 }
  0x64   :  { %517 = vmatpush1.bf16.msra.mxu1 %v1385_v58 }
  0x65   :  { %518 = vmatprep.subr.bf16.mxu1 %v1386_v59 }
  0x68   :  { %519 = vmatpush1.bf16.msra.mxu1 %v1388_v60 }
  0x69   :  { %520 = vmatprep.subr.bf16.mxu1 %v1389_v61  ;;  %v1401_v61 = vld [vmem:[#allocation5] ss:$8 sps:$4 sm:$0xff]  }
  0x6c   :  { %521 = vmatpush1.bf16.msra.mxu1 %v1391_v62  ;;  %v1403_v62 = vld [vmem:[#allocation5 + $0x4] ss:$8 sps:$4 sm:$0xff]  }
  0x6d   :  { %522 = vmatprep.subr.bf16.mxu1 %v1392_v63  ;;  %v1406_v63 = vld [vmem:[#allocation5 + $0x14] ss:$8 sps:$4 sm:$0xff]   ;;  %859 = vmatprep.subr.bf16.mxu0 %v1403_v62 }
  0x6e   :  { %860 = vmatpush1.bf16.msra.mxu0 %v1401_v61 }
  0x6f   :  { %861 = vmatprep.subr.bf16.mxu0 %v1406_v63 }
  0x70   :  { %523 = vmatpush1.bf16.msra.mxu1 %v1394_v1  ;;  %v1404_v1 = vld [vmem:[#allocation5 + $0x10] ss:$8 sps:$4 sm:$0xff]  }
  0x71   :  { %524 = vmatprep.subr.bf16.mxu1 %v1395_v2  ;;  %v1409_v2 = vld [vmem:[#allocation5 + $0x24] ss:$8 sps:$4 sm:$0xff]  }
  0x72   :  { %862 = vmatpush1.bf16.msra.mxu0 %v1404_v1 }
  0x73   :  { %863 = vmatprep.subr.bf16.mxu0 %v1409_v2 }
  0x74   :  { %525 = vmatpush1.bf16.msra.mxu1 %v1397_v3  ;;  %v1407_v3 = vld [vmem:[#allocation5 + $0x20] ss:$8 sps:$4 sm:$0xff]  }
  0x75   :  { %526 = vmatprep.subr.bf16.mxu1 %v1398_v4  ;;  %v1412_v4 = vld [vmem:[#allocation5 + $0x34] ss:$8 sps:$4 sm:$0xff]  }
  0x76   :  { %864 = vmatpush1.bf16.msra.mxu0 %v1407_v3 }
  0x77   :  { %865 = vmatprep.subr.bf16.mxu0 %v1412_v4 }
  0x78   :  { %527 = vmatpush1.bf16.msra.mxu1 %v1400_v5  ;;  %v1410_v5 = vld [vmem:[#allocation5 + $0x30] ss:$8 sps:$4 sm:$0xff]  }
  0x7a   :  { %866 = vmatpush1.bf16.msra.mxu0 %v1410_v5 }
  0x7b   :  { %867 = vmatprep.subr.bf16.mxu0 %v1415_v6 }
 0x113   :  { %v166_v13 = vpop.f32.mrb[0].mxu0 }
 0x114   :  { %v167_v14 = vadd.f32 %v166_v13, %v104_v11  ;;  %v168_v15 = vpop.f32.mrb[1].mxu0 }
 0x115   :  { %v169_v16 = vadd.f32 %v168_v15, %v108_v12  ;;  %v170_v17 = vpop.f32.mrb[2].mxu0 }
 0x116   :  { %v172_v18 = vpop.f32.mrb[3].mxu0  ;;  %v171_v19 = vadd.f32 %v170_v17, %v104_v11 }
 0x117   :  { %v173_v20 = vadd.f32 %v172_v18, %v108_v12  ;;  %v175_v21 = vadd.f32 %v169_v16, %v167_v14 }
 0x119   :  { %176 = vadd.xlane.f32.xlu0 %v175_v21  ;;  %v178_v22 = vadd.f32 %v173_v20, %v171_v19  ;;  %v1231_v21 = vld.sshfl [vmem:[%s1885_s4] sm:$0x11 pattern:$0x75316420] }
 0x11d   :  { %179 = vadd.xlane.f32.xlu0 %v178_v22  ;;  %v259_v22 = vcombine.high %v1231_v21, %v1231_v21 }
 0x1a6   :  { %v177_v41 = vpop.xlane.xlu0 %176 }
 0x1a7   :  { %v182_v42 = vmul.f32 0.00390625, %v177_v41 }
 0x1a9   :  { %v1739_v43 = vsub.f32 %v167_v14, %v182_v42  ;;  %v1741_v44 = vsub.f32 %v169_v16, %v182_v42  ;;  %v222_v14 = vunpack.c.0.s8 %v221_v9  ;;  %v1230_v16 = vld.sshfl [vmem:[%s1884_s3] sm:$0x11 pattern:$0x75316420]  ;;  %v1413_v9 = vld [vmem:[#allocation5 + $0x40] ss:$8 sps:$4 sm:$0xff]  }
 0x1aa   :  { %v180_v45 = vpop.xlane.xlu0 %179  ;;  %868 = vmatpush1.bf16.msra.mxu0 %v1413_v9 }
 0x1ab   :  { %v183_v46 = vmul.f32 0.00390625, %v180_v45  ;;  %v188_v47 = vmul.f32 %v1739_v43, %v1739_v43  ;;  %v189_v48 = vmul.f32 %v1741_v44, %v1741_v44 }
 0x1ad   :  { %v1747_v49 = vsub.f32 %v171_v19, %v183_v46  ;;  %v1749_v50 = vsub.f32 %v173_v20, %v183_v46  ;;  %v192_v51 = vadd.f32 %v189_v48, %v188_v47  ;;  %v219_v19 = vcombine.high %v1230_v16, %v1230_v16 }
 0x1ae   :  { %v1759_v20 = vsub.s32 %v222_v14, %v1726_v7  ;;  %v1419_v14 = vld [vmem:[#allocation5 + $0x60] ss:$8 sps:$4 sm:$0xff]  }
 0x1af   :  { %193 = vadd.xlane.f32.xlu1 %v192_v51  ;;  %v190_v52 = vmul.f32 %v1747_v49, %v1747_v49  ;;  %v191_v53 = vmul.f32 %v1749_v50, %v1749_v50 }
 0x1b0   :  { %v233_v23 = vrot.slane %v219_v19, %v1759_v20  ;;  %v226_v24 = vrot.slane %v1230_v16, %v1759_v20  ;;  %v273_v25 = vrot.slane %v259_v22, %v1759_v20  ;;  %v266_v26 = vrot.slane %v1231_v21, %v1759_v20  ;;  %v1422_v16 = vld [vmem:[#allocation5 + $0x70] ss:$8 sps:$4 sm:$0xff]  }
 0x1b1   :  { %v195_v54 = vadd.f32 %v191_v53, %v190_v52 }
 0x1b2   :  { %v242_v27 = vpack.i.b16 %v233_v23, %v233_v23  ;;  %v235_v28 = vpack.i.b16 %v226_v24, %v226_v24  ;;  %v282_v30 = vpack.i.b16 %v273_v25, %v273_v25  ;;  %v275_v7 = vpack.i.b16 %v266_v26, %v266_v26 }
 0x1b3   :  { %196 = vadd.xlane.f32.xlu1 %v195_v54 }
 0x1b4   :  { %v247_v32 = vrot.slane %v242_v27, %v1729_v8  ;;  %v240_v33 = vrot.slane %v235_v28, %v1729_v8  ;;  %v287_v39 = vrot.slane %v282_v30, %v1729_v8  ;;  %v280_v41 = vrot.slane %v275_v7, %v1729_v8 }
 0x23c   :  { %v194_v11 = vpop.xlane.xlu1 %193 }
 0x23d   :  { %v198_v12 = vmul.f32 0.00390625, %v194_v11  ;;  %v1418_v11 = vld [vmem:[#allocation5 + $0x54] ss:$8 sps:$4 sm:$0xff]  }
 0x23e   :  { %869 = vmatprep.subr.bf16.mxu0 %v1418_v11 }
 0x23f   :  { %v200_v13 = vadd.f32 1e-05, %v198_v12  ;;  %v1416_v12 = vld [vmem:[#allocation5 + $0x50] ss:$8 sps:$4 sm:$0xff]  }
 0x240   :  { %v197_v15 = vpop.xlane.xlu1 %196  ;;  %870 = vmatpush1.bf16.msra.mxu0 %v1416_v12 }
 0x241   :  { %v199_v17 = vmul.f32 0.00390625, %v197_v15  ;;  %1465 = vrsqrt.f32 %v200_v13  ;;  %v1421_v13 = vld [vmem:[#allocation5 + $0x64] ss:$8 sps:$4 sm:$0xff]   ;;  %v1424_v15 = vld [vmem:[#allocation5 + $0x74] ss:$8 sps:$4 sm:$0xff]  }
 0x242   :  { %871 = vmatprep.subr.bf16.mxu0 %v1421_v13 }
 0x243   :  { %v201_v18 = vadd.f32 1e-05, %v199_v17  ;;  %v1427_v17 = vld [vmem:[#allocation5 + $0x84] ss:$8 sps:$4 sm:$0xff]  }
 0x244   :  { %872 = vmatpush1.bf16.msra.mxu0 %v1419_v14 }
 0x245   :  { %1467 = vrsqrt.f32 %v201_v18  ;;  %873 = vmatprep.subr.bf16.mxu0 %v1424_v15  ;;  %v1425_v18 = vld [vmem:[#allocation5 + $0x80] ss:$8 sps:$4 sm:$0xff]  }
 0x248   :  { %874 = vmatpush1.bf16.msra.mxu0 %v1422_v16 }
 0x249   :  { %875 = vmatprep.subr.bf16.mxu0 %v1427_v17 }
 0x24b   :  { %v1466_v29 = vpop.eup %1465 }
 0x24c   :  { %v205_v34 = vmul.f32 %v1466_v29, %v1741_v44  ;;  %v204_v36 = vmul.f32 %v1466_v29, %v1739_v43  ;;  %v324_v43 = vld [vmem:[%s1887_s6] sm:$0x3]  ;;  %876 = vmatpush1.bf16.msra.mxu0 %v1425_v18 }
 0x24f   :  { %v1468_v31 = vpop.eup %1467 }
 0x250   :  { %v207_v35 = vmul.f32 %v1468_v31, %v1749_v50  ;;  %v206_v37 = vmul.f32 %v1468_v31, %v1747_v49  ;;  %v329_v49 = vrot.slane %v324_v43, %v1729_v8  ;;  %v333_v50 = vrot.slane %v324_v43, %v1735_v10 }
 0x252   :  { %v210_v38 = vpack.c.bf16 %v207_v35, %v205_v34  ;;  %v209_v40 = vpack.c.bf16 %v206_v37, %v204_v36  ;;  %v1428_v34 = vld [vmem:[#allocation5 + $0x90] ss:$8 sps:$4 sm:$0xff]   ;;  %v1433_v35 = vld [vmem:[#allocation5 + $0xa4] ss:$8 sps:$4 sm:$0xff]   ;;  %v1431_v36 = vld [vmem:[#allocation5 + $0xa0] ss:$8 sps:$4 sm:$0xff]  }
 0x253   :  { %v1436_v37 = vld [vmem:[#allocation5 + $0xb4] ss:$8 sps:$4 sm:$0xff]  }
 0x254   :  { %v249_v42 = vmul.bf16 %v247_v32, %v210_v38  ;;  %v248_v45 = vmul.bf16 %v240_v33, %v209_v40  ;;  %v1430_v33 = vld [vmem:[#allocation5 + $0x94] ss:$8 sps:$4 sm:$0xff]   ;;  %v1434_v38 = vld [vmem:[#allocation5 + $0xb0] ss:$8 sps:$4 sm:$0xff]   ;;  %v1437_v40 = vld [vmem:[#allocation5 + $0xc0] ss:$8 sps:$4 sm:$0xff]  }
 0x255   :  { %877 = vmatprep.subr.bf16.mxu0 %v1430_v33 }
 0x256   :  { %v289_v46 = vadd.bf16 %v287_v39, %v249_v42  ;;  %v288_v47 = vadd.bf16 %v280_v41, %v248_v45  ;;  %878 = vmatpush1.bf16.msra.mxu0 %v1428_v34  ;;  %v1439_v39 = vld [vmem:[#allocation5 + $0xc4] ss:$8 sps:$4 sm:$0xff]   ;;  %v1442_v41 = vld [vmem:[#allocation5 + $0xd4] ss:$8 sps:$4 sm:$0xff]   ;;  %v1440_v42 = vld [vmem:[#allocation5 + $0xd0] ss:$8 sps:$4 sm:$0xff]  }
 0x257   :  { %879 = vmatprep.subr.bf16.mxu0 %v1433_v35  ;;  %v1443_v45 = vld [vmem:[#allocation5 + $0xe0] ss:$8 sps:$4 sm:$0xff]  }
 0x258   :  { %v291_v48 = vmax.bf16 %v1582_v0, %v289_v46  ;;  %v290_v44 = vmax.bf16 %v1582_v0, %v288_v47  ;;  %v1445_v46 = vld [vmem:[#allocation5 + $0xe4] ss:$8 sps:$4 sm:$0xff]   ;;  %v1448_v47 = vld [vmem:[#allocation5 + $0xf4] ss:$8 sps:$4 sm:$0xff]  }
 0x25a   :  { %528 = vmatprep.mubr.bf16.mxu1 %v291_v48  ;;  %880 = vmatpush1.bf16.msra.mxu0 %v1431_v36  ;;  %v1446_v48 = vld [vmem:[#allocation5 + $0xf0] ss:$8 sps:$4 sm:$0xff]   ;;  %v1449_v36 = vld [vmem:[#allocation7 + $0x40] sm:$0xff]  }
 0x25b   :  { %529 = vmatmul.mubr.bf16.vlgmr.msra.gmra.mrb[0].mxu1 %v290_v44  ;;  %881 = vmatprep.subr.bf16.mxu0 %v1436_v37  ;;  %v1450_v37 = vld [vmem:[#allocation7] sm:$0xff]  }
 0x25c   :  { %1318 = vmatprep.subr.bf16.mxu1 %v1449_v36 }
 0x25d   :  { %1319 = vmatpush3.bf16.msra.mxu1 %v1450_v37 }
 0x25e   :  { %882 = vmatpush1.bf16.msra.mxu0 %v1434_v38 }
 0x25f   :  { %883 = vmatprep.subr.bf16.mxu0 %v1439_v39 }
 0x262   :  { %884 = vmatpush1.bf16.msra.mxu0 %v1437_v40 }
 0x263   :  { %885 = vmatprep.subr.bf16.mxu0 %v1442_v41 }
 0x266   :  { %886 = vmatpush1.bf16.msra.mxu0 %v1440_v42 }
 0x267   :  { %887 = vmatprep.subr.bf16.mxu0 %v1445_v46 }
 0x26a   :  { %888 = vmatpush1.bf16.msra.mxu0 %v1443_v45 }
 0x26b   :  { %889 = vmatprep.subr.bf16.mxu0 %v1448_v47 }
 0x26e   :  { %890 = vmatpush1.bf16.msra.mxu0 %v1446_v48 }
 0x32e   :  { %v530_v51 = vpop.f32.mrb[0].mxu1 }
 0x32f   :  { %v531_v52 = vadd.f32 %v530_v51, %v329_v49  ;;  %v532_v53 = vpop.f32.mrb[1].mxu1 }
 0x330   :  { %v533_v54 = vadd.f32 %v532_v53, %v333_v50  ;;  %v534_v55 = vpop.f32.mrb[2].mxu1 }
 0x331   :  { %v535_v56 = vadd.f32 %v534_v55, %v329_v49  ;;  %v536_v57 = vpop.f32.mrb[3].mxu1  ;;  %v1265_v55 = vld.sshfl [vmem:[%s1889_s8] sm:$0x11 pattern:$0x75316420] }
 0x332   :  { %v537_v58 = vadd.f32 %v536_v57, %v333_v50  ;;  %v539_v59 = vadd.f32 %v533_v54, %v531_v52  ;;  %v1264_v50 = vld.sshfl [vmem:[%s1888_s7] sm:$0x11 pattern:$0x75316420] }
 0x334   :  { %540 = vadd.xlane.f32.xlu0 %v539_v59  ;;  %v542_v60 = vadd.f32 %v537_v58, %v535_v56 }
 0x336   :  { %543 = vadd.xlane.f32.xlu1 %v542_v60  ;;  %v629_v60 = vrot.slane %v1265_v55, %v1759_v20 }
 0x338   :  { %v638_v2 = vpack.i.b16 %v629_v60, %v629_v60  ;;  %v1460_v60 = vld [vmem:[#allocation7 + $0x28] sm:$0xff]  }
 0x33a   :  { %v643_v16 = vrot.slane %v638_v2, %v1729_v8 }
 0x3c1   :  { %v541_v19 = vpop.xlane.xlu0 %540 }
 0x3c2   :  { %v545_v21 = vmul.f32 0.00390625, %v541_v19 }
 0x3c3   :  { %v544_v22 = vpop.xlane.xlu1 %543 }
 0x3c4   :  { %v1783_v23 = vsub.f32 %v531_v52, %v545_v21  ;;  %v1785_v24 = vsub.f32 %v533_v54, %v545_v21  ;;  %v546_v25 = vmul.f32 0.00390625, %v544_v22  ;;  %v582_v54 = vcombine.high %v1264_v50, %v1264_v50 }
 0x3c6   :  { %v1787_v26 = vsub.f32 %v535_v56, %v546_v25  ;;  %v1789_v27 = vsub.f32 %v537_v58, %v546_v25  ;;  %v551_v28 = vmul.f32 %v1783_v23, %v1783_v23  ;;  %v552_v29 = vmul.f32 %v1785_v24, %v1785_v24 }
 0x3c7   :  { %v622_v56 = vcombine.high %v1265_v55, %v1265_v55  ;;  %v596_v57 = vrot.slane %v582_v54, %v1759_v20  ;;  %v589_v58 = vrot.slane %v1264_v50, %v1759_v20  ;;  %v1454_v54 = vld [vmem:[#allocation7 + $0x10] sm:$0xff]   ;;  %v1455_v55 = vld [vmem:[#allocation7 + $0x58] sm:$0xff]  }
 0x3c8   :  { %v555_v30 = vadd.f32 %v552_v29, %v551_v28  ;;  %v553_v7 = vmul.f32 %v1787_v26, %v1787_v26  ;;  %v554_v31 = vmul.f32 %v1789_v27, %v1789_v27 }
 0x3c9   :  { %v636_v59 = vrot.slane %v622_v56, %v1759_v20  ;;  %v605_v61 = vpack.i.b16 %v596_v57, %v596_v57  ;;  %v598_v62 = vpack.i.b16 %v589_v58, %v589_v58  ;;  %v1456_v56 = vld [vmem:[#allocation7 + $0x18] sm:$0xff]   ;;  %v1457_v57 = vld [vmem:[#allocation7 + $0x60] sm:$0xff]  }
 0x3ca   :  { %556 = vadd.xlane.f32.xlu0 %v555_v30  ;;  %v558_v32 = vadd.f32 %v554_v31, %v553_v7  ;;  %v1458_v58 = vld [vmem:[#allocation7 + $0x20] sm:$0xff]  }
 0x3cb   :  { %v645_v1 = vpack.i.b16 %v636_v59, %v636_v59  ;;  %v610_v4 = vrot.slane %v605_v61, %v1729_v8  ;;  %v603_v5 = vrot.slane %v598_v62, %v1729_v8  ;;  %v1459_v59 = vld [vmem:[#allocation7 + $0x68] sm:$0xff]   ;;  %v1461_v61 = vld [vmem:[#allocation7 + $0x70] sm:$0xff]  }
 0x3cc   :  { %559 = vadd.xlane.f32.xlu1 %v558_v32  ;;  %v1462_v62 = vld [vmem:[#allocation7 + $0x30] sm:$0xff]  }
 0x3cd   :  { %v650_v14 = vrot.slane %v645_v1, %v1729_v8  ;;  %v1464_v1 = vld [vmem:[#allocation7 + $0x38] sm:$0xff]  }
 0x457   :  { %v557_v44 = vpop.xlane.xlu0 %556 }
 0x458   :  { %v561_v43 = vmul.f32 0.00390625, %v557_v44 }
 0x459   :  { %v560_v49 = vpop.xlane.xlu1 %559 }
 0x45a   :  { %v563_v51 = vadd.f32 1e-05, %v561_v43  ;;  %v562_v52 = vmul.f32 0.00390625, %v560_v49 }
 0x45c   :  { %1469 = vrsqrt.f32 %v563_v51  ;;  %v564_v53 = vadd.f32 1e-05, %v562_v52  ;;  %v1451_v51 = vld [vmem:[#allocation7 + $0x48] sm:$0xff]  }
 0x45d   :  { %v1452_v52 = vld [vmem:[#allocation7 + $0x8] sm:$0xff]   ;;  %1320 = vmatprep.subr.bf16.mxu1 %v1451_v51 }
 0x45e   :  { %1471 = vrsqrt.f32 %v564_v53  ;;  %1321 = vmatpush3.bf16.msra.mxu1 %v1452_v52  ;;  %v1453_v53 = vld [vmem:[#allocation7 + $0x50] sm:$0xff]  }
 0x45f   :  { %1322 = vmatprep.subr.bf16.mxu1 %v1453_v53 }
 0x462   :  { %1323 = vmatpush3.bf16.msra.mxu1 %v1454_v54 }
 0x463   :  { %1324 = vmatprep.subr.bf16.mxu1 %v1455_v55 }
 0x466   :  { %v1470_v63 = vpop.eup %1469  ;;  %1325 = vmatpush3.bf16.msra.mxu1 %v1456_v56 }
 0x467   :  { %v567_v6 = vmul.f32 %v1470_v63, %v1783_v23  ;;  %v568_v11 = vmul.f32 %v1470_v63, %v1785_v24  ;;  %v687_v24 = vld [vmem:[%s1891_s10] sm:$0x3]  ;;  %1326 = vmatprep.subr.bf16.mxu1 %v1457_v57 }
 0x468   :  { %v1472_v3 = vpop.eup %1471  ;;  %v692_v25 = vrot.slane %v687_v24, %v1729_v8  ;;  %v1463_v63 = vld [vmem:[#allocation7 + $0x78] sm:$0xff]  }
 0x469   :  { %v569_v9 = vmul.f32 %v1472_v3, %v1787_v26  ;;  %v570_v12 = vmul.f32 %v1472_v3, %v1789_v27  ;;  %v696_v26 = vrot.slane %v687_v24, %v1735_v10 }
 0x46a   :  { %1327 = vmatpush3.bf16.msra.mxu1 %v1458_v58 }
 0x46b   :  { %v573_v13 = vpack.c.bf16 %v570_v12, %v568_v11  ;;  %v572_v15 = vpack.c.bf16 %v569_v9, %v567_v6  ;;  %1328 = vmatprep.subr.bf16.mxu1 %v1459_v59 }
 0x46d   :  { %v612_v17 = vmul.bf16 %v610_v4, %v573_v13  ;;  %v611_v18 = vmul.bf16 %v603_v5, %v572_v15  ;;  %v1298_v5 = vld.sshfl [vmem:[%s1892_s11] sm:$0x11 pattern:$0x75316420] }
 0x46e   :  { %1329 = vmatpush3.bf16.msra.mxu1 %v1460_v60  ;;  %v945_v12 = vcombine.high %v1298_v5, %v1298_v5  ;;  %v1299_v13 = vld.sshfl [vmem:[%s1893_s12] sm:$0x11 pattern:$0x75316420] }
 0x46f   :  { %v652_v19 = vadd.bf16 %v650_v14, %v612_v17  ;;  %v651_v21 = vadd.bf16 %v643_v16, %v611_v18  ;;  %1330 = vmatprep.subr.bf16.mxu1 %v1461_v61  ;;  %v985_v14 = vcombine.high %v1299_v13, %v1299_v13  ;;  %v952_v16 = vrot.slane %v1298_v5, %v1759_v20 }
 0x470   :  { %v959_v15 = vrot.slane %v945_v12, %v1759_v20  ;;  %v992_v18 = vrot.slane %v1299_v13, %v1759_v20 }
 0x471   :  { %v654_v22 = vmax.bf16 %v1582_v0, %v652_v19  ;;  %v653_v23 = vmax.bf16 %v1582_v0, %v651_v21  ;;  %v999_v17 = vrot.slane %v985_v14, %v1759_v20  ;;  %v961_v21 = vpack.i.b16 %v952_v16, %v952_v16 }
 0x472   :  { %1331 = vmatpush3.bf16.msra.mxu1 %v1462_v62  ;;  %v968_v19 = vpack.i.b16 %v959_v15, %v959_v15  ;;  %v1001_v24 = vpack.i.b16 %v992_v18, %v992_v18 }
 0x473   :  { %891 = vmatprep.mubr.bf16.mxu0 %v654_v22  ;;  %1332 = vmatprep.subr.bf16.mxu1 %v1463_v63 }
 0x474   :  { %892 = vmatmul.mubr.bf16.vlgmr.msra.gmra.mrb[4].mxu0 %v653_v23  ;;  %v1008_v23 = vpack.i.b16 %v999_v17, %v999_v17 }
 0x476   :  { %1333 = vmatpush3.bf16.msra.mxu1 %v1464_v1  ;;  %v1013_v20 = vrot.slane %v1008_v23, %v1729_v8 }
 0x547   :  { %v893_v27 = vpop.f32.mrb[4].mxu0 }
 0x548   :  { %v894_v28 = vadd.f32 %v893_v27, %v692_v25  ;;  %v895_v29 = vpop.f32.mrb[5].mxu0  ;;  %v966_v27 = vrot.slane %v961_v21, %v1729_v8 }
 0x549   :  { %v896_v30 = vadd.f32 %v895_v29, %v696_v26  ;;  %v897_v7 = vpop.f32.mrb[6].mxu0 }
 0x54a   :  { %v898_v31 = vadd.f32 %v897_v7, %v692_v25  ;;  %v899_v32 = vpop.f32.mrb[7].mxu0 }
 0x54b   :  { %v900_v33 = vadd.f32 %v899_v32, %v696_v26  ;;  %v902_v34 = vadd.f32 %v896_v30, %v894_v28  ;;  %v973_v26 = vrot.slane %v968_v19, %v1729_v8 }
 0x54d   :  { %903 = vadd.xlane.f32.xlu0 %v902_v34  ;;  %v905_v35 = vadd.f32 %v900_v33, %v898_v31 }
 0x54f   :  { %906 = vadd.xlane.f32.xlu1 %v905_v35 }
 0x5da   :  { %v904_v38 = vpop.xlane.xlu0 %903 }
 0x5db   :  { %v908_v39 = vmul.f32 0.00390625, %v904_v38 }
 0x5dc   :  { %v907_v40 = vpop.xlane.xlu1 %906 }
 0x5dd   :  { %v1824_v10 = vsub.f32 %v894_v28, %v908_v39  ;;  %v1826_v41 = vsub.f32 %v896_v30, %v908_v39  ;;  %v909_v42 = vmul.f32 0.00390625, %v907_v40 }
 0x5df   :  { %v1828_v45 = vsub.f32 %v898_v31, %v909_v42  ;;  %v1830_v46 = vsub.f32 %v900_v33, %v909_v42  ;;  %v914_v47 = vmul.f32 %v1824_v10, %v1824_v10  ;;  %v915_v48 = vmul.f32 %v1826_v41, %v1826_v41 }
 0x5e0   :  { %v1006_v33 = vrot.slane %v1001_v24, %v1729_v8 }
 0x5e1   :  { %v918_v44 = vadd.f32 %v915_v48, %v914_v47  ;;  %v916_v43 = vmul.f32 %v1828_v45, %v1828_v45  ;;  %v917_v49 = vmul.f32 %v1830_v46, %v1830_v46 }
 0x5e3   :  { %919 = vadd.xlane.f32.xlu0 %v918_v44  ;;  %v921_v50 = vadd.f32 %v917_v49, %v916_v43 }
 0x5e5   :  { %922 = vadd.xlane.f32.xlu1 %v921_v50 }
 0x670   :  { %v920_v2 = vpop.xlane.xlu0 %919 }
 0x671   :  { %v924_v3 = vmul.f32 0.00390625, %v920_v2 }
 0x672   :  { %v923_v4 = vpop.xlane.xlu1 %922 }
 0x673   :  { %v926_v6 = vadd.f32 1e-05, %v924_v3  ;;  %v925_v9 = vmul.f32 0.00390625, %v923_v4 }
 0x675   :  { %1473 = vrsqrt.f32 %v926_v6  ;;  %v927_v11 = vadd.f32 1e-05, %v925_v9 }
 0x677   :  { %1475 = vrsqrt.f32 %v927_v11 }
 0x67f   :  { %v1474_v22 = vpop.eup %1473 }
 0x680   :  { %v930_v28 = vmul.f32 %v1474_v22, %v1824_v10  ;;  %v931_v29 = vmul.f32 %v1474_v22, %v1826_v41  ;;  %v1300_v10 = vld [vmem:[%s1895_s14] ss:$0 sm:$0xff]  ;;  %s1547_s14 = scalar_lea.vmem %s1213_s21, 256 }
 0x681   :  { %v1476_v25 = vpop.eup %1475  ;;  %p1548_p10 = scmp.ne.s32.totalorder %s1213_s21, %s1547_s14  ;;  %p1553_p12 = scmp.lt.s32.totalorder %s1547_s14, %s1547_s14 }
 0x682   :  { %v932_v30 = vmul.f32 %v1476_v25, %v1828_v45  ;;  %v933_v7 = vmul.f32 %v1476_v25, %v1830_v46 }
 0x683   :  { %p1554_p13 = por %p1553_p12, %p1552_p11 }
 0x684   :  { %v936_v31 = vpack.c.bf16 %v933_v7, %v931_v29  ;;  %v935_v32 = vpack.c.bf16 %v932_v30, %v930_v28 }
 0x685   :  { %p1555_p0 = pnand %p1554_p13, %p1548_p10 }
 0x686   :  { %v975_v34 = vmul.bf16 %v973_v26, %v936_v31  ;;  %v974_v35 = vmul.bf16 %v966_v27, %v935_v32 }
 0x688   :  { %v1015_v36 = vadd.bf16 %v1013_v20, %v975_v34  ;;  %v1014_v37 = vadd.bf16 %v1006_v33, %v974_v35 }
 0x68a   :  { %v1017_v38 = vmax.bf16 %v1582_v0, %v1015_v36  ;;  %v1016_v39 = vmax.bf16 %v1582_v0, %v1014_v37  ;;  %v1317_v0 = vld [vmem:[%s1896_s15] ss:$0 sm:$0xff] }
 0x68c   :  { %1185 = vmatprep.mubr.bf16.mxu1 %v1017_v38 }
 0x68d   :  { %1186 = vmatmul.mubr.bf16.vlgmr.msra.gmra.mrb[4].mxu1 %v1016_v39 }
 0x760   :  { %v1334_v40 = vpop.f32.mrb[4].mxu1 }
 0x761   :  { %v1335_v41 = vpop.f32.mrb[5].mxu1 }
 0x762   :  { %v1336_v42 = vadd.f32 %v1335_v41, %v1334_v40  ;;  %v1337_v45 = vpop.f32.mrb[6].mxu1 }
 0x763   :  { %v1338_v46 = vpop.f32.mrb[7].mxu1 }
 0x764   :  { %v1188_v8 = vadd.f32 %v1336_v42, %v1300_v10  ;;  %v1339_v47 = vadd.f32 %v1338_v46, %v1337_v45 }
 0x766   :  { %1477 = vtanh.f32 %v1188_v8  ;;  %v1191_v48 = vadd.f32 %v1339_v47, %v1300_v10 }
 0x768   :  { %1479 = vtanh.f32 %v1191_v48 }
 0x770   :  { %v1478_v44 = vpop.eup %1477 }
 0x771   :  { %v1203_v43 = vmul.f32 %v1478_v44, %v1317_v0 }
 0x772   :  { %v1480_v49 = vpop.eup %1479 }
 0x773   :  { %v1204_v50 = vmul.f32 %v1480_v49, %v1317_v0  ;;  %1205 = vst [vmem:[#allocation8] sm:$0xff] %v1203_v43 }
 0x775   :  { %1206 = vst [vmem:[#allocation8 + $0x8] sm:$0xff] %v1204_v50 }
 0x776   :  { %1558 = shalt.err (!%p1555_p0)
}
 0x777   :  { %s1559_s15 = scalar_lea.hbm %s1897_s16, 256 }
 0x778   :  { %p1560_p1 = scmp.ne.s32.totalorder %s1897_s16, %s1559_s15  ;;  %p1563_p2 = scmp.lt.u32.totalorder %s1559_s15, %s1897_s16 }
 0x77a   :  { %p1565_p3 = pnand %p1563_p2, %p1560_p1 }
 0x77c   :  { %1568 = shalt.err (!%p1565_p3)
}
 0x77d   :  { %1218 = dma.vmem_to_hbm [thread:$0]  %s1213_s21, 256, %s1897_s16, [#allocation4], %s1577_s18, %s1577_s18, %s1578_s19  }
 0x77e   :  { %1573 = dma.done.wait [#allocation4], 256  }
 0x77f   :  { %1574 = vsyncadd [#allocation4], 4294967040 }
 0x780   :  { %1222 = vsyncpa [#allocation3], 1 }
 0x781   :  { %1223 = vsyncpa [#allocation6], 1 }
 0x782   :  { %1224 = vsyncpa [#allocation4], 1 }

</bundles_post_ra>
